<compile_context>
chip_gen: v5e
topology: v5e:2x2
jax: 0.10.0
libtpu: 0.0.40
codegen_flags: <defaults>
</compile_context>

<pallas_src>
import numpy as np
import jax
import jax.numpy as jnp
from jax import lax
from jax.experimental import pallas as pl
from jax.experimental.pallas import tpu as pltpu  # noqa: F401  (kept per convention)

HIDDEN = 8                      # hidden_size
KSIZE = 3                       # kernel_size
PAD = (KSIZE - 1) // 2
H = W = 32                      # spatial size implied by fc1 = hidden*16*16
CIN = 3
BATCH = 2
PH, PW = H // 2, W // 2         # pooled spatial dims (16, 16)
NPOS = PH * PW                  # 256 pooled positions per image
KTAPS = KSIZE * KSIZE * CIN     # 27 im2col taps
KPAD = 32                       # contraction dim padded to a whole sublane tile
FEAT = HIDDEN * NPOS            # 2048 flattened pooled features
FC1 = 128
NOUT = 3
NPAD = 128                      # fc2 output padded to a full 128-lane row


# ----------------------------------------------------------------------------
# Fused kernel: conv(im2col matmul, channels-on-sublanes) + maxpool-as-4-way-max
#               + bias + ReLU + fc1(bf16 W, f32 acc) + ReLU + fc2
# ----------------------------------------------------------------------------
def cnn1_fused_kernel(xc_ref, wc_ref, bc_ref, w1_ref, b1_ref, w2_ref, b2_ref,
                      o_ref):
    # xc_ref: (32, 4*B*256) f32  im2col taps x (pool-offset d, batch b, pooled pos p)
    #         column = d*(B*256) + b*256 + py*16 + px
    # wc_ref: (8, 32) f32  conv weights (taps padded 27->32), bc_ref: (8, 1)
    # w1_ref: (2048, 128) bf16  = fc1.weight.T (PyTorch flatten order), b1_ref: (1, 128)
    # w2_ref: (128, 128) f32    = fc2.weight.T zero-padded, b2_ref: (1, 128)
    # o_ref : (B, 128) f32  padded logits
    n = xc_ref.shape[1] // 4          # B*256 columns per pool-window offset
    nb = n // NPOS                    # batch size

    conv = jnp.dot(wc_ref[...], xc_ref[...],
                   preferred_element_type=jnp.float32)            # (8, 4n) dense

    # 2x2/stride-2 maxpool == elementwise max over the 4 pool-offset column
    # groups (aligned 512-lane slices); then bias + ReLU (ReLU commutes w/ max).
    m = jnp.maximum(jnp.maximum(conv[:, 0 * n:1 * n], conv[:, 1 * n:2 * n]),
                    jnp.maximum(conv[:, 2 * n:3 * n], conv[:, 3 * n:4 * n]))
    pooled = jnp.maximum(m + bc_ref[...], 0.0)                    # (8, B*256)

    # One feature row per batch element; row-major (c, py, px) flatten matches
    # PyTorch's x.view(B, -1), so fc1 weights need no row permutation.
    feat = jnp.concatenate(
        [pooled[:, b * NPOS:(b + 1) * NPOS].reshape(1, FEAT) for b in range(nb)],
        axis=0)                                                    # (B, 2048)

    h = jnp.dot(feat.astype(jnp.bfloat16), w1_ref[...],
                preferred_element_type=jnp.float32)                # (B, 128)
    h = jnp.maximum(h + b1_ref[...], 0.0)
    o_ref[...] = (jnp.dot(h, w2_ref[...], preferred_element_type=jnp.float32)
                  + b2_ref[...])                                   # dense (B, 128) store


# ----------------------------------------------------------------------------
# One-time weight preparation (hoisted OUT of the jitted per-call path)
# ----------------------------------------------------------------------------
def prepare_params(params):
    conv_w, conv_b, fc1_w, fc1_b, fc2_w, fc2_b = params
    # conv OIHW -> (cout, ky, kx, ci) -> (8, 27) -> pad contraction dim to 32
    wc = jnp.transpose(conv_w, (0, 2, 3, 1)).reshape(HIDDEN, KTAPS)
    wc = jnp.pad(wc, ((0, 0), (0, KPAD - KTAPS)))                  # (8, 32)
    bc = conv_b[:, None].astype(jnp.float32)                       # (8, 1)
    w1 = fc1_w.T.astype(jnp.bfloat16)                              # (2048, 128) bf16
    b1 = fc1_b[None, :].astype(jnp.float32)                        # (1, 128)
    w2 = jnp.zeros((FC1, NPAD), jnp.float32).at[:, :NOUT].set(fc2_w.T)
    b2 = jnp.zeros((1, NPAD), jnp.float32).at[:, :NOUT].set(fc2_b[None, :])
    return wc, bc, w1, b1, w2, b2


# ----------------------------------------------------------------------------
# Per-call forward: build pool-offset-grouped im2col, run the fused kernel
# ----------------------------------------------------------------------------
@jax.jit
def cnn1_forward(x_nchw, prepared):
    wc, bc, w1, b1, w2, b2 = prepared
    b = x_nchw.shape[0]

    # im2col with one column group per pool-window offset (dy, dx):
    #   xc[(ky*3+kx)*3+ci, (dy*2+dx)*(B*256) + bi*256 + py*16 + px]
    #     = x_pad[bi, 2*py+dy+ky, 2*px+dx+kx, ci]
    x = jnp.transpose(x_nchw, (0, 2, 3, 1))                        # (B, 32, 32, 3)
    xp = jnp.pad(x, ((0, 0), (PAD, PAD), (PAD, PAD), (0, 0)))      # (B, 34, 34, 3)
    groups = []
    for dy in range(2):
        for dx in range(2):
            taps = [xp[:, dy + ky:dy + ky + H - 1:2,
                       dx + kx:dx + kx + W - 1:2, :]               # (B, 16, 16, 3)
                    for ky in range(KSIZE) for kx in range(KSIZE)]
            t = jnp.stack(taps, axis=0)                            # (9, B, 16, 16, 3)
            t = jnp.transpose(t, (0, 4, 1, 2, 3))                  # (9, 3, B, 16, 16)
            groups.append(t.reshape(KTAPS, b * NPOS))              # (27, B*256)
    xc = jnp.concatenate(groups, axis=1)                           # (27, 4*B*256)
    xc = jnp.pad(xc, ((0, KPAD - KTAPS), (0, 0)))                  # (32, 4*B*256)

    # Single kernel invocation (no grid): total footprint ~1 MiB of VMEM,
    # weights are DMA'd exactly once, one warm-up, one dense output store.
    out = pl.pallas_call(
        cnn1_fused_kernel,
        out_shape=jax.ShapeDtypeStruct((b, NPAD), jnp.float32),
    )(xc, wc, bc, w1, b1, w2, b2)

    return out[:, :NOUT]


# ----------------------------------------------------------------------------
# Pure-JAX reference (mirrors the PyTorch module) for a correctness check
# ----------------------------------------------------------------------------
def reference_forward(x_nchw, params):
    conv_w, conv_b, fc1_w, fc1_b, fc2_w, fc2_b = params
    y = lax.conv_general_dilated(
        x_nchw, conv_w, window_strides=(1, 1),
        padding=((PAD, PAD), (PAD, PAD)),
        dimension_numbers=("NCHW", "OIHW", "NCHW"))
    y = jnp.maximum(y + conv_b[None, :, None, None], 0.0)
    y = lax.reduce_window(y, -jnp.inf, lax.max,
                          (1, 1, 2, 2), (1, 1, 2, 2), "VALID")
    feat = y.reshape(x_nchw.shape[0], -1)
    h = jnp.maximum(feat @ fc1_w.T + fc1_b, 0.0)
    return h @ fc2_w.T + fc2_b


def init_params(key):
    ks = jax.random.split(key, 6)

    def u(k, shape, fan_in):
        bound = 1.0 / np.sqrt(fan_in)
        return jax.random.uniform(k, shape, jnp.float32, -bound, bound)

    conv_w = u(ks[0], (HIDDEN, CIN, KSIZE, KSIZE), CIN * KSIZE * KSIZE)
    conv_b = u(ks[1], (HIDDEN,), CIN * KSIZE * KSIZE)
    fc1_w = u(ks[2], (FC1, FEAT), FEAT)
    fc1_b = u(ks[3], (FC1,), FEAT)
    fc2_w = u(ks[4], (NOUT, FC1), FC1)
    fc2_b = u(ks[5], (NOUT,), FC1)
    return conv_w, conv_b, fc1_w, fc1_b, fc2_w, fc2_b


if __name__ == "__main__":
    key = jax.random.PRNGKey(0)
    kx, kp = jax.random.split(key)
    x = jax.random.normal(kx, (BATCH, CIN, H, W), jnp.float32)     # NCHW like PyTorch
    params = init_params(kp)
    prepared = prepare_params(params)      # one-time weight relayout / padding

    out = jax.block_until_ready(cnn1_forward(x, prepared))
    ref = jax.block_until_ready(reference_forward(x, params))

    assert out.shape == (BATCH, NOUT)
    # fc1 weights are intentionally quantized to bf16 in the kernel (f32
    # accumulation), so tolerances are slightly looser than pure-f32.
    np.testing.assert_allclose(np.asarray(out), np.asarray(ref),
                               rtol=1e-2, atol=5e-3)
    print("KERNEL_OK")
</pallas_src>

<mosaic_0001>
module attributes {stable_mosaic.version = 11 : i64} {
  func.func @cnn1_fused_kernel(%arg0: memref<32x2048xf32, #tpu.memory_space<vmem>>, %arg1: memref<8x32xf32, #tpu.memory_space<vmem>>, %arg2: memref<8x1xf32, #tpu.memory_space<vmem>>, %arg3: memref<2048x128xbf16, #tpu.memory_space<vmem>>, %arg4: memref<1x128xf32, #tpu.memory_space<vmem>>, %arg5: memref<128x128xf32, #tpu.memory_space<vmem>>, %arg6: memref<1x128xf32, #tpu.memory_space<vmem>>, %arg7: memref<2x128xf32, #tpu.memory_space<vmem>>) attributes {dimension_semantics = [], scalar_prefetch = 0 : i64, scratch_operands = 0 : i64, tpu.core_type = #tpu.core_type<tc>} {
    %c0 = arith.constant 0 : index
    %c0_0 = arith.constant 0 : index
    %0 = vector.load %arg1[%c0, %c0_0] : memref<8x32xf32, #tpu.memory_space<vmem>>, vector<8x32xf32>
    %c0_1 = arith.constant 0 : index
    %c0_2 = arith.constant 0 : index
    %1 = vector.load %arg0[%c0_1, %c0_2] : memref<32x2048xf32, #tpu.memory_space<vmem>>, vector<32x2048xf32>
    %cst = arith.constant dense<0.000000e+00> : vector<8x2048xf32>
    %2 = tpu.matmul %0, %1, %cst {dimension_numbers = #tpu.dot_dimension_numbers<[1], [0], [0], [1], [0, 0, 1, 1], [], []>} : vector<8x32xf32>, vector<32x2048xf32>, vector<8x2048xf32> -> vector<8x2048xf32>
    %3 = vector.extract_strided_slice %2 {offsets = [0, 0], sizes = [8, 512], strides = [1, 1]} : vector<8x2048xf32> to vector<8x512xf32>
    %4 = vector.extract_strided_slice %2 {offsets = [0, 512], sizes = [8, 512], strides = [1, 1]} : vector<8x2048xf32> to vector<8x512xf32>
    %5 = arith.maximumf %3, %4 : vector<8x512xf32>
    %6 = vector.extract_strided_slice %2 {offsets = [0, 1024], sizes = [8, 512], strides = [1, 1]} : vector<8x2048xf32> to vector<8x512xf32>
    %7 = vector.extract_strided_slice %2 {offsets = [0, 1536], sizes = [8, 512], strides = [1, 1]} : vector<8x2048xf32> to vector<8x512xf32>
    %8 = arith.maximumf %6, %7 : vector<8x512xf32>
    %9 = arith.maximumf %5, %8 : vector<8x512xf32>
    %c0_3 = arith.constant 0 : index
    %c0_4 = arith.constant 0 : index
    %10 = vector.load %arg2[%c0_3, %c0_4] : memref<8x1xf32, #tpu.memory_space<vmem>>, vector<8x1xf32>
    %11 = vector.broadcast %10 : vector<8x1xf32> to vector<8x512xf32>
    %12 = arith.addf %9, %11 : vector<8x512xf32>
    %cst_5 = arith.constant 0.000000e+00 : f32
    %13 = vector.broadcast %cst_5 : f32 to vector<8x512xf32>
    %14 = arith.maximumf %12, %13 : vector<8x512xf32>
    %15 = vector.extract_strided_slice %14 {offsets = [0, 0], sizes = [8, 256], strides = [1, 1]} : vector<8x512xf32> to vector<8x256xf32>
    %16 = vector.shape_cast %15 : vector<8x256xf32> to vector<1x2048xf32>
    %17 = vector.extract_strided_slice %14 {offsets = [0, 256], sizes = [8, 256], strides = [1, 1]} : vector<8x512xf32> to vector<8x256xf32>
    %18 = vector.shape_cast %17 : vector<8x256xf32> to vector<1x2048xf32>
    %19 = tpu.concatenate %16, %18 in 0 : vector<1x2048xf32>, vector<1x2048xf32> -> vector<2x2048xf32>
    %20 = arith.truncf %19 : vector<2x2048xf32> to vector<2x2048xbf16>
    %c0_6 = arith.constant 0 : index
    %c0_7 = arith.constant 0 : index
    %21 = vector.load %arg3[%c0_6, %c0_7] : memref<2048x128xbf16, #tpu.memory_space<vmem>>, vector<2048x128xbf16>
    %cst_8 = arith.constant dense<0.000000e+00> : vector<2x128xf32>
    %22 = tpu.matmul %20, %21, %cst_8 {dimension_numbers = #tpu.dot_dimension_numbers<[1], [0], [0], [1], [0, 0, 1, 1], [], []>} : vector<2x2048xbf16>, vector<2048x128xbf16>, vector<2x128xf32> -> vector<2x128xf32>
    %c0_9 = arith.constant 0 : index
    %c0_10 = arith.constant 0 : index
    %23 = vector.load %arg4[%c0_9, %c0_10] : memref<1x128xf32, #tpu.memory_space<vmem>>, vector<1x128xf32>
    %24 = vector.broadcast %23 : vector<1x128xf32> to vector<2x128xf32>
    %25 = arith.addf %22, %24 : vector<2x128xf32>
    %cst_11 = arith.constant 0.000000e+00 : f32
    %26 = vector.broadcast %cst_11 : f32 to vector<2x128xf32>
    %27 = arith.maximumf %25, %26 : vector<2x128xf32>
    %c0_12 = arith.constant 0 : index
    %c0_13 = arith.constant 0 : index
    %28 = vector.load %arg5[%c0_12, %c0_13] : memref<128x128xf32, #tpu.memory_space<vmem>>, vector<128x128xf32>
    %cst_14 = arith.constant dense<0.000000e+00> : vector<2x128xf32>
    %29 = tpu.matmul %27, %28, %cst_14 {dimension_numbers = #tpu.dot_dimension_numbers<[1], [0], [0], [1], [0, 0, 1, 1], [], []>} : vector<2x128xf32>, vector<128x128xf32>, vector<2x128xf32> -> vector<2x128xf32>
    %c0_15 = arith.constant 0 : index
    %c0_16 = arith.constant 0 : index
    %30 = vector.load %arg6[%c0_15, %c0_16] : memref<1x128xf32, #tpu.memory_space<vmem>>, vector<1x128xf32>
    %31 = vector.broadcast %30 : vector<1x128xf32> to vector<2x128xf32>
    %32 = arith.addf %29, %31 : vector<2x128xf32>
    %c0_17 = arith.constant 0 : index
    %c0_18 = arith.constant 0 : index
    %33 = vector.load %arg7[%c0_17, %c0_18] : memref<2x128xf32, #tpu.memory_space<vmem>>, vector<2x128xf32>
    tpu.vector_store %arg7[%c0_17, %c0_18], %32 {strides = array<i32>} : memref<2x128xf32, #tpu.memory_space<vmem>>, vector<2x128xf32>,
    return
  }
}

</mosaic_0001>

<bundles_post_ra>
// kernel: cnn1_forward.1
= control target key start
LH: loop header
LB: loop body
LE: loop exit
PB: predicated region body
PF: predicated region fallthrough
CT: control target
= control target key end

     0   :  { %vm92_vm0 = vcmask 261120   ;;  %s3374_s0 = inlined_call_operand.vmem [shape: f32[32,2048], index: 0, kind: input, shape index: {}]   ;;  %s3375_s1 = inlined_call_operand.vmem [shape: f32[8,32], index: 1, kind: input, shape index: {}]   ;;  %s3376_s2 = inlined_call_operand.vmem [shape: f32[8,1], index: 2, kind: input, shape index: {}]   ;;  %s3377_s3 = inlined_call_operand.vmem [shape: bf16[2048,128], index: 3, kind: input, shape index: {}]   ;;  %s3378_s4 = inlined_call_operand.vmem [shape: f32[1,128], index: 4, kind: input, shape index: {}]   ;;  %s3379_s5 = inlined_call_operand.vmem [shape: f32[128,128], index: 5, kind: input, shape index: {}]   ;;  %s3380_s6 = inlined_call_operand.vmem [shape: f32[1,128], index: 6, kind: input, shape index: {}]   ;;  %s3381_s7 = inlined_call_operand.hbm [shape: f32[2,128], index: 7, kind: output, shape index: {}]  }
   0x1   :  { %v76_v0 = vld [vmem:[%s3374_s0 + $0x180] sm:$0xff]  ;;  %v78_v1 = vld [vmem:[%s3374_s0 + $0x190] sm:$0xff]  ;;  %v79_v2 = vld [vmem:[%s3374_s0 + $0x198] sm:$0xff] }
   0x2   :  { %108 = vmatpush.msra.mxu1 %v76_v0  ;;  %148 = vmatpush.msra.mxu2 %v78_v1  ;;  %v60_v3 = vld [vmem:[%s3374_s0 + $0x100] sm:$0xff]  ;;  %v62_v4 = vld [vmem:[%s3374_s0 + $0x110] sm:$0xff]  ;;  %v63_v5 = vld [vmem:[%s3374_s0 + $0x118] sm:$0xff] }
   0x3   :  { %168 = vmatpush.msra.mxu3 %v79_v2  ;;  %v44_v6 = vld [vmem:[%s3374_s0 + $0x80] sm:$0xff]  ;;  %v46_v7 = vld [vmem:[%s3374_s0 + $0x90] sm:$0xff]  ;;  %v47_v8 = vld [vmem:[%s3374_s0 + $0x98] sm:$0xff] }
   0x4   :  { %109 = vmatpush.msra.mxu1 %v60_v3  ;;  %149 = vmatpush.msra.mxu2 %v62_v4  ;;  %v28_v9 = vld [vmem:[%s3374_s0] sm:$0xff]  ;;  %v30_v10 = vld [vmem:[%s3374_s0 + $0x10] sm:$0xff]  ;;  %v31_v12 = vld [vmem:[%s3374_s0 + $0x18] sm:$0xff] }
   0x5   :  { %169 = vmatpush.msra.mxu3 %v63_v5  ;;  %v84_v11 = vld [vmem:[%s3374_s0 + $0x1c0] sm:$0xff]  ;;  %v77_v14 = vld [vmem:[%s3374_s0 + $0x188] sm:$0xff]  ;;  %v83_v16 = vld [vmem:[%s3374_s0 + $0x1b8] sm:$0xff] }
   0x6   :  { %110 = vmatpush.msra.mxu1 %v44_v6  ;;  %150 = vmatpush.msra.mxu2 %v46_v7  ;;  %v2643_v13 = vld [vmem:[%s3375_s1] sm:$0xff]  ;;  %v61_v18 = vld [vmem:[%s3374_s0 + $0x108] sm:$0xff]  ;;  %v67_v20 = vld [vmem:[%s3374_s0 + $0x138] sm:$0xff] }
   0x7   :  { %170 = vmatpush.msra.mxu3 %v47_v8  ;;  %268 = vmatpush.msra.mxu0 %v84_v11  ;;  %v80_v15 = vld [vmem:[%s3374_s0 + $0x1a0] sm:$0xff]  ;;  %v45_v22 = vld [vmem:[%s3374_s0 + $0x88] sm:$0xff]  ;;  %v51_v24 = vld [vmem:[%s3374_s0 + $0xb8] sm:$0xff] }
   0x8   :  { %111 = vmatpush.msra.mxu1 %v28_v9  ;;  %151 = vmatpush.msra.mxu2 %v30_v10  ;;  %v68_v17 = vld [vmem:[%s3374_s0 + $0x140] sm:$0xff]  ;;  %v29_v26 = vld [vmem:[%s3374_s0 + $0x8] sm:$0xff]  ;;  %v35_v28 = vld [vmem:[%s3374_s0 + $0x38] sm:$0xff] }
   0x9   :  { %171 = vmatpush.msra.mxu3 %v31_v12  ;;  %1870 = vmatmul.msk.f32.vlgmr.msra.gmra.mxu1 %vm92_vm0, %v2643_v13  ;;  %v64_v19 = vld [vmem:[%s3374_s0 + $0x120] sm:$0xff]  ;;  %v81_v30 = vld [vmem:[%s3374_s0 + $0x1a8] sm:$0xff]  ;;  %v82_v31 = vld [vmem:[%s3374_s0 + $0x1b0] sm:$0xff] }
   0xa   :  { %1872 = vmatmul.msk.f32.vlgmr.msra.gmra.mxu2 %vm92_vm0, %v2643_v13  ;;  %1873 = vmatmul.msk.f32.vlgmr.msra.gmra.mxu3 %vm92_vm0, %v2643_v13  ;;  %v52_v21 = vld [vmem:[%s3374_s0 + $0xc0] sm:$0xff]  ;;  %v87_v32 = vld [vmem:[%s3374_s0 + $0x1d8] sm:$0xff]  ;;  %v65_v34 = vld [vmem:[%s3374_s0 + $0x128] sm:$0xff] }
   0xb   :  { %128 = vmatpush.msrb.mxu1 %v77_v14  ;;  %188 = vmatpush.msrb.mxu2 %v80_v15  ;;  %v48_v23 = vld [vmem:[%s3374_s0 + $0xa0] sm:$0xff]  ;;  %v66_v35 = vld [vmem:[%s3374_s0 + $0x130] sm:$0xff]  ;;  %v71_v36 = vld [vmem:[%s3374_s0 + $0x158] sm:$0xff] }
   0xc   :  { %248 = vmatpush.msrb.mxu3 %v83_v16  ;;  %269 = vmatpush.msra.mxu0 %v68_v17  ;;  %v36_v25 = vld [vmem:[%s3374_s0 + $0x40] sm:$0xff]  ;;  %v49_v38 = vld [vmem:[%s3374_s0 + $0xa8] sm:$0xff]  ;;  %v50_v39 = vld [vmem:[%s3374_s0 + $0xb0] sm:$0xff] }
   0xd   :  { %129 = vmatpush.msrb.mxu1 %v61_v18  ;;  %189 = vmatpush.msrb.mxu2 %v64_v19  ;;  %v32_v27 = vld [vmem:[%s3374_s0 + $0x20] sm:$0xff]  ;;  %v55_v40 = vld [vmem:[%s3374_s0 + $0xd8] sm:$0xff]  ;;  %v33_v42 = vld [vmem:[%s3374_s0 + $0x28] sm:$0xff] }
   0xe   :  { %249 = vmatpush.msrb.mxu3 %v67_v20  ;;  %270 = vmatpush.msra.mxu0 %v52_v21  ;;  %v88_v29 = vld [vmem:[%s3374_s0 + $0x1e0] sm:$0xff]  ;;  %v34_v43 = vld [vmem:[%s3374_s0 + $0x30] sm:$0xff]  ;;  %v39_v44 = vld [vmem:[%s3374_s0 + $0x58] sm:$0xff] }
   0xf   :  { %130 = vmatpush.msrb.mxu1 %v45_v22  ;;  %190 = vmatpush.msrb.mxu2 %v48_v23  ;;  %v72_v33 = vld [vmem:[%s3374_s0 + $0x160] sm:$0xff] }
  0x10   :  { %250 = vmatpush.msrb.mxu3 %v51_v24  ;;  %271 = vmatpush.msra.mxu0 %v36_v25  ;;  %v56_v37 = vld [vmem:[%s3374_s0 + $0xe0] sm:$0xff] }
  0x11   :  { %1878 = vmatmul.msk.f32.vlgmr.msra.gmra.mxu0 %vm92_vm0, %v2643_v13  ;;  %131 = vmatpush.msrb.mxu1 %v29_v26  ;;  %v40_v41 = vld [vmem:[%s3374_s0 + $0x60] sm:$0xff] }
  0x12   :  { %191 = vmatpush.msrb.mxu2 %v32_v27  ;;  %251 = vmatpush.msrb.mxu3 %v35_v28 }
  0x13   :  { %348 = vmatpush.msrb.mxu0 %v88_v29  ;;  %1871 = vmatmul.msk.f32.vlgmr.msrb.gmra.mxu1 %vm92_vm0, %v2643_v13 }
  0x14   :  { %1874 = vmatmul.msk.f32.vlgmr.msrb.gmra.mxu2 %vm92_vm0, %v2643_v13  ;;  %1877 = vmatmul.msk.f32.vlgmr.msrb.gmra.mxu3 %vm92_vm0, %v2643_v13 }
  0x15   :  { %208 = vmatpush.msra.mxu1 %v81_v30  ;;  %228 = vmatpush.msra.mxu2 %v82_v31 }
  0x16   :  { %328 = vmatpush.msra.mxu3 %v87_v32  ;;  %349 = vmatpush.msrb.mxu0 %v72_v33 }
  0x17   :  { %209 = vmatpush.msra.mxu1 %v65_v34  ;;  %229 = vmatpush.msra.mxu2 %v66_v35 }
  0x18   :  { %329 = vmatpush.msra.mxu3 %v71_v36  ;;  %350 = vmatpush.msrb.mxu0 %v56_v37 }
  0x19   :  { %210 = vmatpush.msra.mxu1 %v49_v38  ;;  %230 = vmatpush.msra.mxu2 %v50_v39 }
  0x1a   :  { %12 = vsyncpa [#allocation3], 0  ;;  %330 = vmatpush.msra.mxu3 %v55_v40  ;;  %351 = vmatpush.msrb.mxu0 %v40_v41  ;;  %v85_v45 = vld [vmem:[%s3374_s0 + $0x1c8] sm:$0xff]  ;;  %v86_v46 = vld [vmem:[%s3374_s0 + $0x1d0] sm:$0xff]  ;;  %v2558_v55 = vmov 0   ;;  %vm445_vm1 = vcmask 1043456  }
  0x1b   :  { %1882 = vmatmul.msk.f32.vlgmr.msrb.gmra.mxu0 %vm92_vm0, %v2643_v13  ;;  %211 = vmatpush.msra.mxu1 %v33_v42  ;;  %v91_v47 = vld [vmem:[%s3374_s0 + $0x1f8] sm:$0xff]  ;;  %v69_v48 = vld [vmem:[%s3374_s0 + $0x148] sm:$0xff]  ;;  %v70_v49 = vld [vmem:[%s3374_s0 + $0x150] sm:$0xff]  ;;  %vm543_vm2 = vcmask 1040384   ;;  %s2560_s14 = smov [#allocation2]   ;;  %s1861_s18 = sshll.u32 %s3381_s7, 4  ;;  %s1862_s18 = int_to_ptr.hbm [resolvable:$true] %s1861_s18 }
  0x1c   :  { %231 = vmatpush.msra.mxu2 %v34_v43  ;;  %331 = vmatpush.msra.mxu3 %v39_v44  ;;  %v75_v50 = vld [vmem:[%s3374_s0 + $0x178] sm:$0xff]  ;;  %v53_v51 = vld [vmem:[%s3374_s0 + $0xc8] sm:$0xff]  ;;  %v428_v52 = vld [vmem:[%s3376_s2] sm:$0xff]  ;;  %s1859_s15 = sshll.u32 %s2560_s14, 4  ;;  %s1860_s15 = int_to_ptr.vmem [resolvable:$true] %s1859_s15 }
  0x1d   :  { %1875 = vmatmul.msk.f32.vlgmr.msra.gmra.mxu1 %vm92_vm0, %v2643_v13  ;;  %1876 = vmatmul.msk.f32.vlgmr.msra.gmra.mxu2 %vm92_vm0, %v2643_v13  ;;  %v54_v53 = vld [vmem:[%s3374_s0 + $0xd0] sm:$0xff]  ;;  %v59_v54 = vld [vmem:[%s3374_s0 + $0xf8] sm:$0xff]  ;;  %v37_v57 = vld [vmem:[%s3374_s0 + $0x48] sm:$0xff] }
  0x1e   :  { %1881 = vmatmul.msk.f32.vlgmr.msra.gmra.mxu3 %vm92_vm0, %v2643_v13  ;;  %288 = vmatpush.msrb.mxu1 %v85_v45  ;;  %v2405_v56 = vld [vmem:[%s3377_s3 + $0x38] sm:$0xff]  ;;  %v38_v58 = vld [vmem:[%s3374_s0 + $0x50] sm:$0xff]  ;;  %v89_v60 = vld [vmem:[%s3374_s0 + $0x1e8] sm:$0xff] }
  0x1f   :  { %308 = vmatpush.msrb.mxu2 %v86_v46  ;;  %408 = vmatpush.msrb.mxu3 %v91_v47  ;;  %v43_v59 = vld [vmem:[%s3374_s0 + $0x78] sm:$0xff]  ;;  %v90_v62 = vld [vmem:[%s3374_s0 + $0x1f0] sm:$0xff]  ;;  %v73_v63 = vld [vmem:[%s3374_s0 + $0x168] sm:$0xff] }
  0x20   :  { %289 = vmatpush.msrb.mxu1 %v69_v48  ;;  %2529 = vset.pattern.permute.xlu0 %v2558_v55  ;;  %v2429_v61 = vld [vmem:[%s3377_s3 + $0xf8] sm:$0xff]  ;;  %v74_v0 = vld [vmem:[%s3374_s0 + $0x170] sm:$0xff]  ;;  %v57_v1 = vld [vmem:[%s3374_s0 + $0xe8] sm:$0xff] }
  0x21   :  { %309 = vmatpush.msrb.mxu2 %v70_v49  ;;  %409 = vmatpush.msrb.mxu3 %v75_v50  ;;  %v58_v2 = vld [vmem:[%s3374_s0 + $0xf0] sm:$0xff]  ;;  %v41_v3 = vld [vmem:[%s3374_s0 + $0x68] sm:$0xff]  ;;  %v2413_v5 = vld [vmem:[%s3377_s3 + $0x78] sm:$0xff] }
  0x22   :  { %290 = vmatpush.msrb.mxu1 %v53_v51  ;;  %431 = vperm.xlu0 %2529, %v428_v52   ;;  %v42_v4 = vld [vmem:[%s3374_s0 + $0x70] sm:$0xff]  ;;  %v2421_v6 = vld [vmem:[%s3377_s3 + $0xb8] sm:$0xff]  ;;  %v2403_v11 = vld [vmem:[%s3377_s3 + $0x28] sm:$0xff] }
  0x23   :  { %310 = vmatpush.msrb.mxu2 %v54_v53  ;;  %410 = vmatpush.msrb.mxu3 %v59_v54  ;;  %v2404_v7 = vld [vmem:[%s3377_s3 + $0x30] sm:$0xff]  ;;  %v2411_v12 = vld [vmem:[%s3377_s3 + $0x68] sm:$0xff]  ;;  %v2402_v15 = vld [vmem:[%s3377_s3 + $0x20] sm:$0xff] }
  0x24   :  { %291 = vmatpush.msrb.mxu1 %v37_v57  ;;  %1604 = vmatpush.bf16.msra.mxu0 %v2405_v56  ;;  %v2412_v8 = vld [vmem:[%s3377_s3 + $0x70] sm:$0xff]  ;;  %v2427_v14 = vld [vmem:[%s3377_s3 + $0xe8] sm:$0xff]  ;;  %v2410_v16 = vld [vmem:[%s3377_s3 + $0x60] sm:$0xff] }
  0x25   :  { %311 = vmatpush.msrb.mxu2 %v38_v58  ;;  %411 = vmatpush.msrb.mxu3 %v43_v59  ;;  %v2420_v9 = vld [vmem:[%s3377_s3 + $0xb0] sm:$0xff]  ;;  %v2418_v17 = vld [vmem:[%s3377_s3 + $0xa0] sm:$0xff]  ;;  %v2401_v19 = vld [vmem:[%s3377_s3 + $0x18] sm:$0xff] }
  0x26   :  { %1879 = vmatmul.msk.f32.vlgmr.msrb.gmra.mxu1 %vm92_vm0, %v2643_v13  ;;  %1880 = vmatmul.msk.f32.vlgmr.msrb.gmra.mxu2 %vm92_vm0, %v2643_v13  ;;  %v2428_v10 = vld [vmem:[%s3377_s3 + $0xf0] sm:$0xff]  ;;  %v2426_v18 = vld [vmem:[%s3377_s3 + $0xe0] sm:$0xff]  ;;  %v2409_v20 = vld [vmem:[%s3377_s3 + $0x58] sm:$0xff] }
  0x27   :  { %1885 = vmatmul.msk.f32.vlgmr.msrb.gmra.mxu3 %vm92_vm0, %v2643_v13  ;;  %368 = vmatpush.msra.mxu1 %v89_v60  ;;  %v2417_v21 = vld [vmem:[%s3377_s3 + $0x98] sm:$0xff]  ;;  %v2400_v23 = vld [vmem:[%s3377_s3 + $0x10] sm:$0xff]  ;;  %v2399_v27 = vld [vmem:[%s3377_s3 + $0x8] sm:$0xff] }
  0x28   :  { %388 = vmatpush.msra.mxu2 %v90_v62  ;;  %1643 = vmatpush.bf16.msra.mxu3 %v2429_v61  ;;  %v2425_v22 = vld [vmem:[%s3377_s3 + $0xd8] sm:$0xff]  ;;  %v2408_v24 = vld [vmem:[%s3377_s3 + $0x50] sm:$0xff]  ;;  %v2407_v28 = vld [vmem:[%s3377_s3 + $0x48] sm:$0xff] }
  0x29   :  { %369 = vmatpush.msra.mxu1 %v73_v63  ;;  %1605 = vmatpush.bf16.msra.mxu0 %v2404_v7  ;;  %v2416_v25 = vld [vmem:[%s3377_s3 + $0x90] sm:$0xff]  ;;  %v2415_v29 = vld [vmem:[%s3377_s3 + $0x88] sm:$0xff]  ;;  %v2398_v31 = vld [vmem:[%s3377_s3] sm:$0xff] }
  0x2a   :  { %389 = vmatpush.msra.mxu2 %v74_v0  ;;  %v2424_v26 = vld [vmem:[%s3377_s3 + $0xd0] sm:$0xff]  ;;  %v2423_v30 = vld [vmem:[%s3377_s3 + $0xc8] sm:$0xff]  ;;  %v2406_v32 = vld [vmem:[%s3377_s3 + $0x40] sm:$0xff] }
  0x2b   :  { %370 = vmatpush.msra.mxu1 %v57_v1  ;;  %v2414_v33 = vld [vmem:[%s3377_s3 + $0x80] sm:$0xff]  ;;  %v2437_v35 = vld [vmem:[%s3377_s3 + $0x138] sm:$0xff]  ;;  %v2436_v40 = vld [vmem:[%s3377_s3 + $0x130] sm:$0xff] }
  0x2c   :  { %390 = vmatpush.msra.mxu2 %v58_v2  ;;  %1644 = vmatpush.bf16.msra.mxu3 %v2428_v10  ;;  %v2422_v34 = vld [vmem:[%s3377_s3 + $0xc0] sm:$0xff]  ;;  %v2445_v36 = vld [vmem:[%s3377_s3 + $0x178] sm:$0xff]  ;;  %v2444_v41 = vld [vmem:[%s3377_s3 + $0x170] sm:$0xff] }
  0x2d   :  { %371 = vmatpush.msra.mxu1 %v41_v3  ;;  %1606 = vmatpush.bf16.msra.mxu0 %v2403_v11  ;;  %v2453_v37 = vld [vmem:[%s3377_s3 + $0x1b8] sm:$0xff]  ;;  %v2452_v42 = vld [vmem:[%s3377_s3 + $0x1b0] sm:$0xff]  ;;  %v2435_v44 = vld [vmem:[%s3377_s3 + $0x128] sm:$0xff] }
  0x2e   :  { %391 = vmatpush.msra.mxu2 %v42_v4  ;;  %1883 = vmatmul.msk.f32.vlgmr.msra.gmra.mxu1 %vm92_vm0, %v2643_v13  ;;  %v2461_v38 = vld [vmem:[%s3377_s3 + $0x1f8] sm:$0xff]  ;;  %v2460_v43 = vld [vmem:[%s3377_s3 + $0x1f0] sm:$0xff]  ;;  %v2443_v45 = vld [vmem:[%s3377_s3 + $0x168] sm:$0xff] }
  0x2f   :  { %1884 = vmatmul.msk.f32.vlgmr.msra.gmra.mxu2 %vm92_vm0, %v2643_v13  ;;  %1617 = vmatpush.bf16.msrb.mxu1 %v2413_v5  ;;  %v2419_v13 = vld [vmem:[%s3377_s3 + $0xa8] sm:$0xff]  ;;  %v2434_v51 = vld [vmem:[%s3377_s3 + $0x120] sm:$0xff]  ;;  %v2433_v55 = vld [vmem:[%s3377_s3 + $0x118] sm:$0xff] }
  0x30   :  { %1630 = vmatpush.bf16.msrb.mxu2 %v2421_v6  ;;  %1645 = vmatpush.bf16.msra.mxu3 %v2427_v14  ;;  %v2451_v46 = vld [vmem:[%s3377_s3 + $0x1a8] sm:$0xff]  ;;  %v2442_v52 = vld [vmem:[%s3377_s3 + $0x160] sm:$0xff]  ;;  %v2441_v56 = vld [vmem:[%s3377_s3 + $0x158] sm:$0xff] }
  0x31   :  { %1607 = vmatpush.bf16.msra.mxu0 %v2402_v15  ;;  %v2459_v49 = vld [vmem:[%s3377_s3 + $0x1e8] sm:$0xff]  ;;  %v2450_v53 = vld [vmem:[%s3377_s3 + $0x1a0] sm:$0xff]  ;;  %v2449_v57 = vld [vmem:[%s3377_s3 + $0x198] sm:$0xff] }
  0x32   :  { %v2458_v54 = vld [vmem:[%s3377_s3 + $0x1e0] sm:$0xff]  ;;  %v2457_v58 = vld [vmem:[%s3377_s3 + $0x1d8] sm:$0xff]  ;;  %v2432_v61 = vld [vmem:[%s3377_s3 + $0x110] sm:$0xff] }
  0x33   :  { %1618 = vmatpush.bf16.msrb.mxu1 %v2412_v8  ;;  %v2440_v62 = vld [vmem:[%s3377_s3 + $0x150] sm:$0xff]  ;;  %v2431_v3 = vld [vmem:[%s3377_s3 + $0x108] sm:$0xff]  ;;  %v2430_v7 = vld [vmem:[%s3377_s3 + $0x100] sm:$0xff] }
  0x34   :  { %1631 = vmatpush.bf16.msrb.mxu2 %v2420_v9  ;;  %1646 = vmatpush.bf16.msra.mxu3 %v2426_v18  ;;  %v2448_v63 = vld [vmem:[%s3377_s3 + $0x190] sm:$0xff]  ;;  %v2439_v4 = vld [vmem:[%s3377_s3 + $0x148] sm:$0xff]  ;;  %v2438_v8 = vld [vmem:[%s3377_s3 + $0x140] sm:$0xff] }
  0x35   :  { %1608 = vmatpush.bf16.msra.mxu0 %v2401_v19  ;;  %v2456_v0 = vld [vmem:[%s3377_s3 + $0x1d0] sm:$0xff]  ;;  %v2447_v5 = vld [vmem:[%s3377_s3 + $0x188] sm:$0xff]  ;;  %v2446_v10 = vld [vmem:[%s3377_s3 + $0x180] sm:$0xff] }
  0x36   :  { %v2455_v6 = vld [vmem:[%s3377_s3 + $0x1c8] sm:$0xff]  ;;  %v2454_v11 = vld [vmem:[%s3377_s3 + $0x1c0] sm:$0xff] }
  0x37   :  { %1619 = vmatpush.bf16.msrb.mxu1 %v2411_v12 }
  0x38   :  { %1632 = vmatpush.bf16.msrb.mxu2 %v2419_v13  ;;  %1647 = vmatpush.bf16.msra.mxu3 %v2425_v22 }
  0x39   :  { %1609 = vmatpush.bf16.msra.mxu0 %v2400_v23 }
  0x3b   :  { %1620 = vmatpush.bf16.msrb.mxu1 %v2410_v16 }
  0x3c   :  { %1633 = vmatpush.bf16.msrb.mxu2 %v2418_v17  ;;  %1648 = vmatpush.bf16.msra.mxu3 %v2424_v26 }
  0x3d   :  { %1610 = vmatpush.bf16.msra.mxu0 %v2399_v27 }
  0x3f   :  { %1621 = vmatpush.bf16.msrb.mxu1 %v2409_v20 }
  0x40   :  { %1634 = vmatpush.bf16.msrb.mxu2 %v2417_v21  ;;  %1649 = vmatpush.bf16.msra.mxu3 %v2423_v30 }
  0x41   :  { %1611 = vmatpush.bf16.msra.mxu0 %v2398_v31  ;;  %v2559_v31 = vmov 1935823168  }
  0x43   :  { %1622 = vmatpush.bf16.msrb.mxu1 %v2408_v24 }
  0x44   :  { %1635 = vmatpush.bf16.msrb.mxu2 %v2416_v25  ;;  %1650 = vmatpush.bf16.msra.mxu3 %v2422_v34 }
  0x45   :  { %1656 = vmatpush.bf16.msrb.mxu0 %v2437_v35 }
  0x47   :  { %1623 = vmatpush.bf16.msrb.mxu1 %v2407_v28 }
  0x48   :  { %1636 = vmatpush.bf16.msrb.mxu2 %v2415_v29  ;;  %1695 = vmatpush.bf16.msrb.mxu3 %v2461_v38 }
  0x49   :  { %1657 = vmatpush.bf16.msrb.mxu0 %v2436_v40 }
  0x4b   :  { %1624 = vmatpush.bf16.msrb.mxu1 %v2406_v32  ;;  %v452_v32 = vunpack.c.l.s4 %v2559_v31 }
  0x4c   :  { %1637 = vmatpush.bf16.msrb.mxu2 %v2414_v33  ;;  %1696 = vmatpush.bf16.msrb.mxu3 %v2460_v43 }
  0x4d   :  { %1658 = vmatpush.bf16.msrb.mxu0 %v2435_v44  ;;  %v3042_v40 = vunpack.c.0.s8 %v452_v32 }
  0x4f   :  { %1669 = vmatpush.bf16.msra.mxu1 %v2445_v36 }
  0x50   :  { %1682 = vmatpush.bf16.msra.mxu2 %v2453_v37  ;;  %1697 = vmatpush.bf16.msrb.mxu3 %v2459_v49 }
  0x51   :  { %1659 = vmatpush.bf16.msrb.mxu0 %v2434_v51 }
  0x53   :  { %1670 = vmatpush.bf16.msra.mxu1 %v2444_v41 }
  0x54   :  { %1683 = vmatpush.bf16.msra.mxu2 %v2452_v42  ;;  %1698 = vmatpush.bf16.msrb.mxu3 %v2458_v54 }
  0x55   :  { %1660 = vmatpush.bf16.msrb.mxu0 %v2433_v55 }
  0x57   :  { %1671 = vmatpush.bf16.msra.mxu1 %v2443_v45 }
  0x58   :  { %1684 = vmatpush.bf16.msra.mxu2 %v2451_v46  ;;  %1699 = vmatpush.bf16.msrb.mxu3 %v2457_v58 }
  0x59   :  { %1661 = vmatpush.bf16.msrb.mxu0 %v2432_v61 }
  0x5b   :  { %1672 = vmatpush.bf16.msra.mxu1 %v2442_v52 }
  0x5c   :  { %1685 = vmatpush.bf16.msra.mxu2 %v2450_v53  ;;  %1700 = vmatpush.bf16.msrb.mxu3 %v2456_v0  ;;  %v2469_v0 = vld [vmem:[%s3377_s3 + $0x238] sm:$0xff] }
  0x5d   :  { %1662 = vmatpush.bf16.msrb.mxu0 %v2431_v3  ;;  %v2485_v3 = vld [vmem:[%s3377_s3 + $0x2b8] sm:$0xff] }
  0x5f   :  { %1673 = vmatpush.bf16.msra.mxu1 %v2441_v56 }
  0x60   :  { %1686 = vmatpush.bf16.msra.mxu2 %v2449_v57  ;;  %1701 = vmatpush.bf16.msrb.mxu3 %v2455_v6  ;;  %v2476_v6 = vld [vmem:[%s3377_s3 + $0x270] sm:$0xff] }
  0x61   :  { %1663 = vmatpush.bf16.msrb.mxu0 %v2430_v7  ;;  %v2484_v7 = vld [vmem:[%s3377_s3 + $0x2b0] sm:$0xff] }
  0x63   :  { %1674 = vmatpush.bf16.msra.mxu1 %v2440_v62 }
  0x64   :  { %1687 = vmatpush.bf16.msra.mxu2 %v2448_v63  ;;  %1702 = vmatpush.bf16.msrb.mxu3 %v2454_v11  ;;  %v2483_v11 = vld [vmem:[%s3377_s3 + $0x2a8] sm:$0xff] }
  0x67   :  { %1675 = vmatpush.bf16.msra.mxu1 %v2439_v4  ;;  %v2493_v4 = vld [vmem:[%s3377_s3 + $0x2f8] sm:$0xff] }
  0x68   :  { %1688 = vmatpush.bf16.msra.mxu2 %v2447_v5  ;;  %v2468_v5 = vld [vmem:[%s3377_s3 + $0x230] sm:$0xff] }
  0x6b   :  { %1676 = vmatpush.bf16.msra.mxu1 %v2438_v8  ;;  %v2492_v8 = vld [vmem:[%s3377_s3 + $0x2f0] sm:$0xff] }
  0x6c   :  { %1689 = vmatpush.bf16.msra.mxu2 %v2446_v10  ;;  %v2475_v10 = vld [vmem:[%s3377_s3 + $0x268] sm:$0xff] }
  0x86   :  { %v2941_v39 = vpop.f32.mrf.mxu1 }
  0x8d   :  { %v2964_v47 = vpop.f32.mrf.mxu2  ;;  %v2966_v48 = vpop.f32.mrf.mxu3 }
  0x8e   :  { %v273_v2 = vpop.f32.mrf.mxu0 }
  0x90   :  { %v2971_v50 = vpop.f32.mrf.mxu1 }
  0x94   :  { %v432_v25 = vpop.permute.xlu0 %431 }
  0x97   :  { %v193_v59 = vpop.f32.mrf.mxu2  ;;  %v253_v60 = vpop.f32.mrf.mxu3 }
  0x98   :  { %v353_v14 = vpop.f32.mrf.mxu0  ;;  %v416_v15 = vmax.f32 %v2941_v39, %v193_v59  ;;  %v419_v19 = vmax.f32 %v2966_v48, %v253_v60 }
  0x99   :  { %v420_v16 = vmax.f32 %v273_v2, %v353_v14 }
  0x9a   :  { %v213_v1 = vpop.f32.mrf.mxu1 }
  0x9b   :  { %v424_v22 = vmax.f32 %v416_v15, %v420_v16  ;;  %v417_v23 = vmax.f32 %v2971_v50, %v213_v1  ;;  %v2477_v1 = vld [vmem:[%s3377_s3 + $0x278] sm:$0xff] }
  0x9d   :  { %v3036_v28 = vadd.f32 %v432_v25, %v424_v22 }
  0x9f   :  { %v438_v37 = vmax.f32 %v3036_v28, 0.0  ;;  %v2480_v28 = vld [vmem:[%s3377_s3 + $0x290] sm:$0xff] }
  0xa0   :  { %v233_v9 = vpop.f32.mrf.mxu2 }
  0xa1   :  { %v333_v12 = vpop.f32.mrf.mxu3  ;;  %v418_v35 = vmax.f32 %v2964_v47, %v233_v9  ;;  %v2467_v9 = vld [vmem:[%s3377_s3 + $0x228] sm:$0xff] }
  0xa3   :  { %v293_v13 = vpop.f32.mrf.mxu1 }
  0xa9   :  { %v313_v17 = vpop.f32.mrf.mxu2 }
  0xaa   :  { %v413_v18 = vpop.f32.mrf.mxu3 }
  0xab   :  { %v423_v20 = vmax.f32 %v333_v12, %v413_v18  ;;  %v373_v21 = vpop.f32.mrf.mxu1  ;;  %v2491_v12 = vld [vmem:[%s3377_s3 + $0x2e8] sm:$0xff] }
  0xac   :  { %v421_v24 = vmax.f32 %v293_v13, %v373_v21 }
  0xad   :  { %v427_v26 = vmax.f32 %v419_v19, %v423_v20  ;;  %v2466_v19 = vld [vmem:[%s3377_s3 + $0x220] sm:$0xff] }
  0xae   :  { %v425_v27 = vmax.f32 %v417_v23, %v421_v24  ;;  %v2474_v20 = vld [vmem:[%s3377_s3 + $0x260] sm:$0xff] }
  0xaf   :  { %v437_v30 = vadd.f32 %v432_v25, %v427_v26  ;;  %v2482_v23 = vld [vmem:[%s3377_s3 + $0x2a0] sm:$0xff] }
  0xb0   :  { %v435_v29 = vadd.f32 %v432_v25, %v425_v27  ;;  %v2490_v24 = vld [vmem:[%s3377_s3 + $0x2e0] sm:$0xff] }
  0xb1   :  { %v441_v39 = vmax.f32 %v437_v30, 0.0 }
  0xb2   :  { %v439_v33 = vmax.f32 %v435_v29, 0.0  ;;  %v393_v34 = vpop.f32.mrf.mxu2 }
  0xb3   :  { %v422_v36 = vmax.f32 %v313_v17, %v393_v34  ;;  %v3050_v44 = vrot.slane %v441_v39, 4  ;;  %v2473_v34 = vld [vmem:[%s3377_s3 + $0x258] sm:$0xff] }
  0xb4   :  { %v3040_v38 = vrot.slane %v439_v33, 4  ;;  %v2465_v33 = vld [vmem:[%s3377_s3 + $0x218] sm:$0xff] }
  0xb5   :  { %v426_v41 = vmax.f32 %v418_v35, %v422_v36  ;;  %v2481_v39 = vld [vmem:[%s3377_s3 + $0x298] sm:$0xff] }
  0xb6   :  { %v446_v42 = vsel %vm445_vm1, %v438_v37, %v3040_v38 }
  0xb7   :  { %v3048_v43 = vadd.f32 %v432_v25, %v426_v41  ;;  %v3053_v45 = vperm.slane %v446_v42, %v3042_v40  ;;  %v2489_v41 = vld [vmem:[%s3377_s3 + $0x2d8] sm:$0xff]  ;;  %v447_v42 = vsel %vm445_vm1, %v3040_v38, %v438_v37  ;;  %v2488_v37 = vld [vmem:[%s3377_s3 + $0x2d0] sm:$0xff] }
  0xb9   :  { %v440_v46 = vmax.f32 %v3048_v43, 0.0  ;;  %v477_v49 = vperm.slane %v3053_v45, 0  ;;  %v478_v50 = vperm.slane %v3053_v45, 1  ;;  %v479_v53 = vperm.slane %v3053_v45, 2 }
  0xba   :  { %v480_v55 = vperm.slane %v3053_v45, 3  ;;  %v481_v17 = vperm.slane %v3053_v45, 4  ;;  %v482_v18 = vperm.slane %v3053_v45, 5  ;;  %v483_v21 = vperm.slane %v3053_v45, 6 }
  0xbb   :  { %v462_v47 = vsel %vm445_vm1, %v440_v46, %v3050_v44  ;;  %v484_v22 = vperm.slane %v3053_v45, 7  ;;  %v463_v30 = vsel %vm445_vm1, %v3050_v44, %v440_v46  ;;  %v2464_v44 = vld [vmem:[%s3377_s3 + $0x210] sm:$0xff]  ;;  %v448_v46 = vrot.slane %v447_v42, 4 }
  0xbc   :  { %v3061_v48 = vperm.slane %v462_v47, %v3042_v40  ;;  %v464_v43 = vrot.slane %v463_v30, 4  ;;  %v2472_v45 = vld [vmem:[%s3377_s3 + $0x250] sm:$0xff]  ;;  %v2463_v47 = vld [vmem:[%s3377_s3 + $0x208] sm:$0xff] }
  0xbd   :  { %v2512_v30 = vld [vmem:[%s3377_s3 + $0x390] sm:$0xff] }
  0xbe   :  { %v511_v51 = vperm.slane %v3061_v48, 0  ;;  %v512_v52 = vperm.slane %v3061_v48, 1  ;;  %v513_v54 = vperm.slane %v3061_v48, 2  ;;  %v514_v56 = vperm.slane %v3061_v48, 3 }
  0xbf   :  { %v515_v13 = vperm.slane %v3061_v48, 4  ;;  %v516_v14 = vperm.slane %v3061_v48, 5  ;;  %v517_v15 = vperm.slane %v3061_v48, 6  ;;  %v518_v16 = vperm.slane %v3061_v48, 7  ;;  %v2471_v48 = vld [vmem:[%s3377_s3 + $0x248] sm:$0xff] }
  0xc0   :  { %v544_v57 = vsel %vm543_vm2, %v477_v49, %v511_v51  ;;  %v545_v58 = vsel %vm543_vm2, %v478_v50, %v512_v52  ;;  %v546_v59 = vsel %vm543_vm2, %v479_v53, %v513_v54  ;;  %v547_v63 = vsel %vm543_vm2, %v480_v55, %v514_v56  ;;  %v2479_v50 = vld [vmem:[%s3377_s3 + $0x288] sm:$0xff]  ;;  %v2470_v54 = vld [vmem:[%s3377_s3 + $0x240] sm:$0xff] }
  0xc1   :  { %v560_v60 = vpack.c.bf16 %v544_v57, %v544_v57  ;;  %v561_v61 = vpack.c.bf16 %v545_v58, %v545_v58  ;;  %v562_v62 = vpack.c.bf16 %v546_v59, %v546_v59  ;;  %v563_v2 = vpack.c.bf16 %v547_v63, %v547_v63  ;;  %v2487_v51 = vld [vmem:[%s3377_s3 + $0x2c8] sm:$0xff]  ;;  %v2478_v57 = vld [vmem:[%s3377_s3 + $0x280] sm:$0xff] }
  0xc2   :  { %v548_v25 = vsel %vm543_vm2, %v481_v17, %v515_v13  ;;  %v549_v26 = vsel %vm543_vm2, %v482_v18, %v516_v14  ;;  %v550_v27 = vsel %vm543_vm2, %v483_v21, %v517_v15  ;;  %v551_v29 = vsel %vm543_vm2, %v484_v22, %v518_v16  ;;  %v2486_v58 = vld [vmem:[%s3377_s3 + $0x2c0] sm:$0xff]  ;;  %v2516_v13 = vld [vmem:[%s3377_s3 + $0x3b0] sm:$0xff]  ;;  %v2499_v15 = vld [vmem:[%s3377_s3 + $0x328] sm:$0xff] }
  0xc3   :  { %1612 = vmatmul.bf16.vlgmr.msra.gmra.mxu0 %v560_v60  ;;  %1625 = vmatmul.bf16.vlgmr.msrb.gmra.mxu1 %v561_v61  ;;  %v564_v31 = vpack.c.bf16 %v548_v25, %v548_v25  ;;  %v565_v32 = vpack.c.bf16 %v549_v26, %v549_v26  ;;  %v566_v35 = vpack.c.bf16 %v550_v27, %v550_v27  ;;  %v2501_v61 = vld [vmem:[%s3377_s3 + $0x338] sm:$0xff]  ;;  %v2524_v14 = vld [vmem:[%s3377_s3 + $0x3f0] sm:$0xff]  ;;  %v2507_v16 = vld [vmem:[%s3377_s3 + $0x368] sm:$0xff] }
  0xc4   :  { %1638 = vmatmul.bf16.vlgmr.msrb.gmra.mxu2 %v562_v62  ;;  %1651 = vmatmul.bf16.vlgmr.msra.gmra.mxu3 %v563_v2  ;;  %v567_v36 = vpack.c.bf16 %v551_v29, %v551_v29  ;;  %v3168_v38 = vperm.slane %v464_v43, %v3042_v40  ;;  %v3177_v49 = vperm.slane %v448_v46, %v3042_v40  ;;  %v2462_v40 = vld [vmem:[%s3377_s3 + $0x200] sm:$0xff]  ;;  %v2509_v62 = vld [vmem:[%s3377_s3 + $0x378] sm:$0xff]  ;;  %v2515_v17 = vld [vmem:[%s3377_s3 + $0x3a8] sm:$0xff] }
  0xc5   :  { %1708 = vmatpush.bf16.msra.mxu0 %v2469_v0  ;;  %1721 = vmatpush.bf16.msrb.mxu1 %v2477_v1  ;;  %v2517_v1 = vld [vmem:[%s3377_s3 + $0x3b8] sm:$0xff]  ;;  %v2523_v18 = vld [vmem:[%s3377_s3 + $0x3e8] sm:$0xff]  ;;  %v2514_v21 = vld [vmem:[%s3377_s3 + $0x3a0] sm:$0xff] }
  0xc6   :  { %1734 = vmatpush.bf16.msrb.mxu2 %v2485_v3  ;;  %1747 = vmatpush.bf16.msra.mxu3 %v2493_v4  ;;  %v519_v52 = vperm.slane %v3168_v38, 0  ;;  %v520_v53 = vperm.slane %v3168_v38, 1  ;;  %v521_v55 = vperm.slane %v3168_v38, 2  ;;  %v522_v56 = vperm.slane %v3168_v38, 3  ;;  %v2525_v2 = vld [vmem:[%s3377_s3 + $0x3f8] sm:$0xff]  ;;  %v2522_v22 = vld [vmem:[%s3377_s3 + $0x3e0] sm:$0xff] }
  0xc7   :  { %v485_v59 = vperm.slane %v3177_v49, 0  ;;  %v486_v60 = vperm.slane %v3177_v49, 1  ;;  %v487_v63 = vperm.slane %v3177_v49, 2  ;;  %v488_v0 = vperm.slane %v3177_v49, 3  ;;  %v2513_v25 = vld [vmem:[%s3377_s3 + $0x398] sm:$0xff]  ;;  %v2496_v27 = vld [vmem:[%s3377_s3 + $0x310] sm:$0xff] }
  0xc8   :  { %v2521_v26 = vld [vmem:[%s3377_s3 + $0x3d8] sm:$0xff]  ;;  %v2504_v29 = vld [vmem:[%s3377_s3 + $0x350] sm:$0xff]  ;;  %v526_v42 = vperm.slane %v3168_v38, 7  ;;  %v2494_v43 = vld [vmem:[%s3377_s3 + $0x300] sm:$0xff]  ;;  %v490_v46 = vperm.slane %v3177_v49, 5 }
  0xc9   :  { %1709 = vmatpush.bf16.msra.mxu0 %v2468_v5  ;;  %1722 = vmatpush.bf16.msrb.mxu1 %v2476_v6  ;;  %v552_v3 = vsel %vm543_vm2, %v485_v59, %v519_v52  ;;  %v553_v4 = vsel %vm543_vm2, %v486_v60, %v520_v53  ;;  %v554_v5 = vsel %vm543_vm2, %v487_v63, %v521_v55 }
  0xca   :  { %1735 = vmatpush.bf16.msrb.mxu2 %v2484_v7  ;;  %1748 = vmatpush.bf16.msra.mxu3 %v2492_v8  ;;  %v555_v6 = vsel %vm543_vm2, %v488_v0, %v522_v56  ;;  %v568_v7 = vpack.c.bf16 %v552_v3, %v552_v3  ;;  %v569_v8 = vpack.c.bf16 %v553_v4, %v553_v4  ;;  %v1826_v3 = vld [vmem:[%s3379_s5 + $0x68] sm:$0xff]  ;;  %v1825_v4 = vld [vmem:[%s3379_s5 + $0x60] sm:$0xff] }
  0xcd   :  { %1710 = vmatpush.bf16.msra.mxu0 %v2467_v9  ;;  %1723 = vmatpush.bf16.msrb.mxu1 %v2475_v10  ;;  %v2500_v9 = vld [vmem:[%s3377_s3 + $0x330] sm:$0xff] }
  0xce   :  { %1736 = vmatpush.bf16.msrb.mxu2 %v2483_v11  ;;  %1749 = vmatpush.bf16.msra.mxu3 %v2491_v12  ;;  %v2508_v10 = vld [vmem:[%s3377_s3 + $0x370] sm:$0xff]  ;;  %v570_v11 = vpack.c.bf16 %v554_v5, %v554_v5  ;;  %v571_v12 = vpack.c.bf16 %v555_v6, %v555_v6  ;;  %v1824_v5 = vld [vmem:[%s3379_s5 + $0x58] sm:$0xff] }
  0xcf   :  { %v1823_v6 = vld [vmem:[%s3379_s5 + $0x50] sm:$0xff] }
  0xd1   :  { %1711 = vmatpush.bf16.msra.mxu0 %v2466_v19  ;;  %1724 = vmatpush.bf16.msrb.mxu1 %v2474_v20  ;;  %v2498_v19 = vld [vmem:[%s3377_s3 + $0x320] sm:$0xff] }
  0xd2   :  { %1737 = vmatpush.bf16.msrb.mxu2 %v2482_v23  ;;  %1750 = vmatpush.bf16.msra.mxu3 %v2490_v24  ;;  %v2506_v20 = vld [vmem:[%s3377_s3 + $0x360] sm:$0xff]  ;;  %v2497_v23 = vld [vmem:[%s3377_s3 + $0x318] sm:$0xff] }
  0xd3   :  { %1664 = vmatmul.bf16.vlgmr.msrb.gmra.mxu0 %v564_v31  ;;  %1677 = vmatmul.bf16.vlgmr.msra.gmra.mxu1 %v565_v32  ;;  %v2505_v24 = vld [vmem:[%s3377_s3 + $0x358] sm:$0xff]  ;;  %v2520_v31 = vld [vmem:[%s3377_s3 + $0x3d0] sm:$0xff]  ;;  %v2495_v32 = vld [vmem:[%s3377_s3 + $0x308] sm:$0xff] }
  0xd4   :  { %1690 = vmatmul.bf16.vlgmr.msra.gmra.mxu2 %v566_v35  ;;  %1703 = vmatmul.bf16.vlgmr.msrb.gmra.mxu3 %v567_v36  ;;  %v2519_v35 = vld [vmem:[%s3377_s3 + $0x3c8] sm:$0xff]  ;;  %v523_v36 = vperm.slane %v3168_v38, 4 }
  0xd5   :  { %1712 = vmatpush.bf16.msra.mxu0 %v2465_v33  ;;  %1725 = vmatpush.bf16.msrb.mxu1 %v2473_v34  ;;  %v2503_v33 = vld [vmem:[%s3377_s3 + $0x348] sm:$0xff] }
  0xd6   :  { %1738 = vmatpush.bf16.msrb.mxu2 %v2481_v39  ;;  %1751 = vmatpush.bf16.msra.mxu3 %v2489_v41  ;;  %v2511_v34 = vld [vmem:[%s3377_s3 + $0x388] sm:$0xff]  ;;  %v524_v39 = vperm.slane %v3168_v38, 5  ;;  %v525_v41 = vperm.slane %v3168_v38, 6  ;;  %v491_v38 = vperm.slane %v3177_v49, 6 }
  0xd9   :  { %1713 = vmatpush.bf16.msra.mxu0 %v2464_v44  ;;  %1726 = vmatpush.bf16.msrb.mxu1 %v2472_v45  ;;  %v2502_v44 = vld [vmem:[%s3377_s3 + $0x340] sm:$0xff]  ;;  %v489_v45 = vperm.slane %v3177_v49, 4 }
  0xda   :  { %1739 = vmatpush.bf16.msrb.mxu2 %v2480_v28  ;;  %1752 = vmatpush.bf16.msra.mxu3 %v2488_v37  ;;  %v2510_v28 = vld [vmem:[%s3377_s3 + $0x380] sm:$0xff] }
  0xdb   :  { %v2518_v37 = vld [vmem:[%s3377_s3 + $0x3c0] sm:$0xff] }
  0xdd   :  { %1714 = vmatpush.bf16.msra.mxu0 %v2463_v47  ;;  %1727 = vmatpush.bf16.msrb.mxu1 %v2471_v48  ;;  %v492_v47 = vperm.slane %v3177_v49, 7  ;;  %v556_v48 = vsel %vm543_vm2, %v489_v45, %v523_v36 }
  0xde   :  { %1740 = vmatpush.bf16.msrb.mxu2 %v2479_v50  ;;  %1753 = vmatpush.bf16.msra.mxu3 %v2487_v51  ;;  %v557_v50 = vsel %vm543_vm2, %v490_v46, %v524_v39  ;;  %v558_v51 = vsel %vm543_vm2, %v491_v38, %v525_v41  ;;  %v572_v53 = vpack.c.bf16 %v556_v48, %v556_v48  ;;  %v1813_v39 = vld [vmem:[%s3379_s5] sm:$0xff] }
  0xdf   :  { %v559_v52 = vsel %vm543_vm2, %v492_v47, %v526_v42 }
  0xe0   :  { %v575_v55 = vpack.c.bf16 %v559_v52, %v559_v52 }
  0xe1   :  { %1715 = vmatpush.bf16.msra.mxu0 %v2462_v40  ;;  %1728 = vmatpush.bf16.msrb.mxu1 %v2470_v54  ;;  %v573_v40 = vpack.c.bf16 %v557_v50, %v557_v50  ;;  %v574_v54 = vpack.c.bf16 %v558_v51, %v558_v51 }
  0xe2   :  { %1741 = vmatpush.bf16.msrb.mxu2 %v2478_v57  ;;  %1754 = vmatpush.bf16.msra.mxu3 %v2486_v58 }
  0xe4   :  { %1716 = vmatmul.bf16.vlgmr.msra.gmra.mxu0 %v568_v7  ;;  %1729 = vmatmul.bf16.vlgmr.msrb.gmra.mxu1 %v569_v8 }
  0xe5   :  { %1760 = vmatpush.bf16.msrb.mxu0 %v2501_v61  ;;  %1773 = vmatpush.bf16.msra.mxu1 %v2509_v62  ;;  %v1828_v61 = vld [vmem:[%s3379_s5 + $0x78] sm:$0xff]  ;;  %v1827_v62 = vld [vmem:[%s3379_s5 + $0x70] sm:$0xff] }
  0xe6   :  { %1786 = vmatpush.bf16.msra.mxu2 %v2517_v1  ;;  %1799 = vmatpush.bf16.msrb.mxu3 %v2525_v2 }
  0xe7   :  { %1742 = vmatmul.bf16.vlgmr.msrb.gmra.mxu2 %v570_v11  ;;  %1755 = vmatmul.bf16.vlgmr.msra.gmra.mxu3 %v571_v12  ;;  %v2530_v12 = vld [vmem:[%s3378_s4] ss:$0 sm:$0xff] }
  0xe9   :  { %1761 = vmatpush.bf16.msrb.mxu0 %v2500_v9  ;;  %1774 = vmatpush.bf16.msra.mxu1 %v2508_v10  ;;  %v1822_v9 = vld [vmem:[%s3379_s5 + $0x48] sm:$0xff] }
  0xea   :  { %1787 = vmatpush.bf16.msra.mxu2 %v2516_v13  ;;  %1800 = vmatpush.bf16.msrb.mxu3 %v2524_v14  ;;  %v1821_v13 = vld [vmem:[%s3379_s5 + $0x40] sm:$0xff]  ;;  %v1820_v14 = vld [vmem:[%s3379_s5 + $0x38] sm:$0xff] }
  0xed   :  { %1762 = vmatpush.bf16.msrb.mxu0 %v2499_v15  ;;  %1775 = vmatpush.bf16.msra.mxu1 %v2507_v16 }
  0xee   :  { %1788 = vmatpush.bf16.msra.mxu2 %v2515_v17  ;;  %1801 = vmatpush.bf16.msrb.mxu3 %v2523_v18 }
  0xf1   :  { %1763 = vmatpush.bf16.msrb.mxu0 %v2498_v19  ;;  %1776 = vmatpush.bf16.msra.mxu1 %v2506_v20 }
  0xf2   :  { %1789 = vmatpush.bf16.msra.mxu2 %v2514_v21  ;;  %1802 = vmatpush.bf16.msrb.mxu3 %v2522_v22  ;;  %v1819_v21 = vld [vmem:[%s3379_s5 + $0x30] sm:$0xff]  ;;  %v1818_v22 = vld [vmem:[%s3379_s5 + $0x28] sm:$0xff] }
  0xf5   :  { %1764 = vmatpush.bf16.msrb.mxu0 %v2497_v23  ;;  %1777 = vmatpush.bf16.msra.mxu1 %v2505_v24  ;;  %v1817_v24 = vld [vmem:[%s3379_s5 + $0x20] sm:$0xff] }
  0xf6   :  { %1790 = vmatpush.bf16.msra.mxu2 %v2513_v25  ;;  %1803 = vmatpush.bf16.msrb.mxu3 %v2521_v26 }
  0xf9   :  { %1765 = vmatpush.bf16.msrb.mxu0 %v2496_v27  ;;  %1778 = vmatpush.bf16.msra.mxu1 %v2504_v29 }
  0xfa   :  { %1791 = vmatpush.bf16.msra.mxu2 %v2512_v30  ;;  %1804 = vmatpush.bf16.msrb.mxu3 %v2520_v31 }
  0xfd   :  { %1766 = vmatpush.bf16.msrb.mxu0 %v2495_v32  ;;  %1779 = vmatpush.bf16.msra.mxu1 %v2503_v33  ;;  %v1816_v32 = vld [vmem:[%s3379_s5 + $0x18] sm:$0xff]  ;;  %v1815_v33 = vld [vmem:[%s3379_s5 + $0x10] sm:$0xff] }
  0xfe   :  { %1792 = vmatpush.bf16.msra.mxu2 %v2511_v34  ;;  %1805 = vmatpush.bf16.msrb.mxu3 %v2519_v35  ;;  %v1814_v35 = vld [vmem:[%s3379_s5 + $0x8] sm:$0xff] }
 0x101   :  { %1767 = vmatpush.bf16.msrb.mxu0 %v2494_v43  ;;  %1780 = vmatpush.bf16.msra.mxu1 %v2502_v44 }
 0x102   :  { %1793 = vmatpush.bf16.msra.mxu2 %v2510_v28  ;;  %1806 = vmatpush.bf16.msrb.mxu3 %v2518_v37 }
 0x104   :  { %1768 = vmatmul.bf16.vlgmr.msrb.gmra.mxu0 %v572_v53  ;;  %1781 = vmatmul.bf16.vlgmr.msra.gmra.mxu1 %v573_v40 }
 0x105   :  { %1794 = vmatmul.bf16.vlgmr.msra.gmra.mxu2 %v574_v54  ;;  %1807 = vmatmul.bf16.vlgmr.msrb.gmra.mxu3 %v575_v55 }
 0x106   :  { %1833 = vmatpush.msra.mxu0 %v1828_v61 }
 0x108   :  { %1834 = vmatpush.msra.mxu0 %v1827_v62 }
 0x10a   :  { %1835 = vmatpush.msra.mxu0 %v1826_v3 }
 0x10c   :  { %1836 = vmatpush.msra.mxu0 %v1825_v4 }
 0x10e   :  { %1837 = vmatpush.msra.mxu0 %v1824_v5 }
 0x110   :  { %1838 = vmatpush.msra.mxu0 %v1823_v6 }
 0x112   :  { %1839 = vmatpush.msra.mxu0 %v1822_v9 }
 0x114   :  { %1840 = vmatpush.msra.mxu0 %v1821_v13 }
 0x116   :  { %1841 = vmatpush.msra.mxu0 %v1820_v14 }
 0x118   :  { %1842 = vmatpush.msra.mxu0 %v1819_v21 }
 0x11a   :  { %1843 = vmatpush.msra.mxu0 %v1818_v22 }
 0x11c   :  { %1844 = vmatpush.msra.mxu0 %v1817_v24 }
 0x11e   :  { %1845 = vmatpush.msra.mxu0 %v1816_v32 }
 0x120   :  { %1846 = vmatpush.msra.mxu0 %v1815_v33 }
 0x122   :  { %1847 = vmatpush.msra.mxu0 %v1814_v35 }
 0x124   :  { %1848 = vmatpush.msra.mxu0 %v1813_v39 }
 0x140   :  { %v1613_v49 = vpop.f32.mrf.mxu0  ;;  %v1626_v56 = vpop.f32.mrf.mxu1 }
 0x141   :  { %v1614_v15 = vadd.f32 %v2530_v12, %v1613_v49 }
 0x143   :  { %v1627_v18 = vadd.f32 %v1626_v56, %v1614_v15 }
 0x147   :  { %v1639_v57 = vpop.f32.mrf.mxu2  ;;  %v1652_v58 = vpop.f32.mrf.mxu3 }
 0x148   :  { %v1615_v59 = vpop.f32.mrf.mxu0  ;;  %v1628_v60 = vpop.f32.mrf.mxu1  ;;  %v1640_v23 = vadd.f32 %v1639_v57, %v1627_v18  ;;  %v2531_v57 = vld [vmem:[%s3380_s6] ss:$0 sm:$0xff] }
 0x14a   :  { %v1653_v25 = vadd.f32 %v1652_v58, %v1640_v23 }
 0x14f   :  { %v1641_v63 = vpop.f32.mrf.mxu2  ;;  %v1654_v0 = vpop.f32.mrf.mxu3 }
 0x150   :  { %v1665_v1 = vpop.f32.mrf.mxu0  ;;  %v1678_v2 = vpop.f32.mrf.mxu1 }
 0x151   :  { %v1666_v26 = vadd.f32 %v1665_v1, %v1653_v25 }
 0x153   :  { %v1679_v34 = vadd.f32 %v1678_v2, %v1666_v26 }
 0x157   :  { %v1691_v7 = vpop.f32.mrf.mxu2  ;;  %v1704_v8 = vpop.f32.mrf.mxu3 }
 0x158   :  { %v1667_v10 = vpop.f32.mrf.mxu0  ;;  %v1680_v11 = vpop.f32.mrf.mxu1  ;;  %v1692_v36 = vadd.f32 %v1691_v7, %v1679_v34 }
 0x15a   :  { %v1705_v43 = vadd.f32 %v1704_v8, %v1692_v36 }
 0x15f   :  { %v1693_v16 = vpop.f32.mrf.mxu2  ;;  %v1706_v17 = vpop.f32.mrf.mxu3 }
 0x161   :  { %v1717_v19 = vpop.f32.mrf.mxu0  ;;  %v1730_v20 = vpop.f32.mrf.mxu1 }
 0x162   :  { %v1718_v44 = vadd.f32 %v1717_v19, %v1705_v43 }
 0x164   :  { %v1731_v45 = vadd.f32 %v1730_v20, %v1718_v44 }
 0x169   :  { %v1719_v30 = vpop.f32.mrf.mxu0  ;;  %v1732_v31 = vpop.f32.mrf.mxu1 }
 0x16a   :  { %v1743_v27 = vpop.f32.mrf.mxu2  ;;  %v1756_v29 = vpop.f32.mrf.mxu3 }
 0x16b   :  { %v1744_v46 = vadd.f32 %v1743_v27, %v1731_v45 }
 0x16d   :  { %v1757_v28 = vadd.f32 %v1756_v29, %v1744_v46 }
 0x172   :  { %v1745_v41 = vpop.f32.mrf.mxu2  ;;  %v1758_v42 = vpop.f32.mrf.mxu3 }
 0x181   :  { %v1769_v37 = vpop.f32.mrf.mxu0  ;;  %v1782_v38 = vpop.f32.mrf.mxu1 }
 0x182   :  { %v1770_v47 = vadd.f32 %v1769_v37, %v1757_v28 }
 0x184   :  { %v1783_v48 = vadd.f32 %v1782_v38, %v1770_v47 }
 0x188   :  { %v1795_v50 = vpop.f32.mrf.mxu2  ;;  %v1808_v51 = vpop.f32.mrf.mxu3 }
 0x189   :  { %v1796_v52 = vadd.f32 %v1795_v50, %v1783_v48  ;;  %v1771_v53 = vpop.f32.mrf.mxu0  ;;  %v1784_v40 = vpop.f32.mrf.mxu1 }
 0x18b   :  { %v1809_v54 = vadd.f32 %v1808_v51, %v1796_v52 }
 0x18d   :  { %v1812_v55 = vmax.f32 %v1809_v54, 0.0 }
 0x18f   :  { %1849 = vmatmul.f32.vlgmr.msra.gmra.mxu0 %v1812_v55 }
 0x190   :  { %v1797_v49 = vpop.f32.mrf.mxu2  ;;  %v1810_v56 = vpop.f32.mrf.mxu3 }
 0x20c   :  { %v1850_v58 = vpop.f32.mrf.mxu0 }
 0x20d   :  { %v1851_v59 = vadd.f32 %v2531_v57, %v1850_v58 }
 0x20f   :  { %1853 = vst [vmem:[#allocation2] sm:$0x3] %v1851_v59 }
 0x210   :  { %1864 = dma.vmem_to_hbm [thread:$0]  %s1860_s15, 32, %s1862_s18, [#allocation3]  }
 0x211   :  { %2556 = dma.done.wait [#allocation3], 32  }
 0x212   :  { %2557 = vsyncadd [#allocation3], 4294967264 }
 0x213   :  { %1869 = vsyncpa [#allocation3], 1 }

</bundles_post_ra>
